<compile_context>
chip_gen: v7x
topology: tpu7x:2x2x1
jax: 0.10.0
libtpu: 0.0.40
codegen_flags: <defaults>
</compile_context>

<pallas_src>
import functools

import jax
import jax.numpy as jnp
from jax.experimental import pallas as pl
from jax.experimental.pallas import tpu as pltpu

HIDDEN1 = 256
HIDDEN2 = 256
HIDDEN3 = 128
OUT_PAD = 128          # lane-dense padded output width
TB_CAP = 256           # upper bound on the batch tile (sweep: prefer 128 on v5e)
TB_ALIGN = 16          # multiple of 16 keeps bf16 output sublane-packing clean


def _round_up(n, m):
    return ((n + m - 1) // m) * m


def _choose_tb(batch, tb_cap=TB_CAP):
    """Adaptive batch tile.

    * Small batches: tile = round_up(B, 16), no padding to 256.
    * Large batches: cap the tile at half the (aligned) batch so the parallel
      grid axis always has >= 2 steps -> both v7x TensorCores are used.
    """
    ba = _round_up(batch, TB_ALIGN)
    tb = min(tb_cap, ba)
    if ba >= 2 * TB_ALIGN:
        tb = min(tb, _round_up(ba // 2, TB_ALIGN))
    return tb


def dqn_kernel(x_ref,
               w1_ref, b1_ref,
               w2_ref, b2_ref,
               w3_ref, b3_ref,
               w4_ref, b4_ref,
               o_ref):
    # One (tb, state_dim) batch tile per grid step; weights are VMEM-resident.
    # bf16 MXU operands, f32 accumulation; bias-add/ReLU on the f32 VPU path.
    x = x_ref[...].astype(jnp.bfloat16)

    h = jnp.dot(x, w1_ref[...], preferred_element_type=jnp.float32) + b1_ref[...]
    h = jnp.maximum(h, 0.0)

    h = jnp.dot(h.astype(jnp.bfloat16), w2_ref[...],
                preferred_element_type=jnp.float32) + b2_ref[...]
    h = jnp.maximum(h, 0.0)

    h = jnp.dot(h.astype(jnp.bfloat16), w3_ref[...],
                preferred_element_type=jnp.float32) + b3_ref[...]
    h = jnp.maximum(h, 0.0)

    out = jnp.dot(h.astype(jnp.bfloat16), w4_ref[...],
                  preferred_element_type=jnp.float32) + b4_ref[...]
    # bf16 store: halves the dominant HBM write stream (o_ref dtype is bf16).
    o_ref[...] = out.astype(o_ref.dtype)


def make_dqn_params(key, state_dim, action_dim=5, dtype=jnp.float32):
    """PyTorch-style Linear init (uniform in [-1/sqrt(fan_in), 1/sqrt(fan_in)]).
    Weights stored (in, out); biases stored (1, out)."""
    dims = [(state_dim, HIDDEN1), (HIDDEN1, HIDDEN2),
            (HIDDEN2, HIDDEN3), (HIDDEN3, action_dim)]
    params = []
    for fan_in, fan_out in dims:
        key, kw, kb = jax.random.split(key, 3)
        bound = 1.0 / float(fan_in) ** 0.5
        w = jax.random.uniform(kw, (fan_in, fan_out), dtype=dtype,
                               minval=-bound, maxval=bound)
        b = jax.random.uniform(kb, (1, fan_out), dtype=dtype,
                               minval=-bound, maxval=bound)
        params.append((w, b))
    return params


def prepare_dqn_params(params):
    """One-time weight prep hoisted OUT of the per-call jit:
    pad the last layer to a lane-dense 128-wide output and pre-cast weights to
    bf16.  Returns (prepared_tuple, action_dim)."""
    (w1, b1), (w2, b2), (w3, b3), (w4, b4) = params
    action_dim = int(w4.shape[1])

    w4p = jnp.zeros((w4.shape[0], OUT_PAD), w4.dtype).at[:, :action_dim].set(w4)
    b4p = jnp.zeros((1, OUT_PAD), b4.dtype).at[:, :action_dim].set(b4)

    prepared = (
        w1.astype(jnp.bfloat16), b1.astype(jnp.float32),
        w2.astype(jnp.bfloat16), b2.astype(jnp.float32),
        w3.astype(jnp.bfloat16), b3.astype(jnp.float32),
        w4p.astype(jnp.bfloat16), b4p.astype(jnp.float32),
    )
    return jax.device_put(prepared), action_dim


@functools.partial(jax.jit, static_argnames=("action_dim", "tb_cap"))
def dqn_forward(x, prepared, *, action_dim, tb_cap=TB_CAP):
    """x: (B, state_dim) float32 -> (B, action_dim) float32."""
    w1, b1, w2, b2, w3, b3, w4, b4 = prepared
    B, state_dim = x.shape

    tb = _choose_tb(B, tb_cap)
    b_pad = _round_up(B, tb)
    if b_pad != B:
        x = jnp.pad(x, ((0, b_pad - B), (0, 0)))

    grid = (b_pad // tb,)
    resident = lambda i: (0, 0)   # weights/biases: same block for every step

    flops = 2 * b_pad * (state_dim * HIDDEN1 + HIDDEN1 * HIDDEN2
                         + HIDDEN2 * HIDDEN3 + HIDDEN3 * OUT_PAD)
    bytes_accessed = (x.size * x.dtype.itemsize
                      + sum(a.size * a.dtype.itemsize for a in prepared)
                      + b_pad * OUT_PAD * 2)            # bf16 output

    out_padded = pl.pallas_call(
        dqn_kernel,
        out_shape=jax.ShapeDtypeStruct((b_pad, OUT_PAD), jnp.bfloat16),
        grid_spec=pltpu.PrefetchScalarGridSpec(
            num_scalar_prefetch=0,
            grid=grid,
            in_specs=[
                pl.BlockSpec((tb, state_dim), lambda i: (i, 0)),   # x tile
                pl.BlockSpec((state_dim, HIDDEN1), resident),      # w1 (bf16)
                pl.BlockSpec((1, HIDDEN1), resident),              # b1 (f32)
                pl.BlockSpec((HIDDEN1, HIDDEN2), resident),        # w2
                pl.BlockSpec((1, HIDDEN2), resident),              # b2
                pl.BlockSpec((HIDDEN2, HIDDEN3), resident),        # w3
                pl.BlockSpec((1, HIDDEN3), resident),              # b3
                pl.BlockSpec((HIDDEN3, OUT_PAD), resident),        # w4 (padded)
                pl.BlockSpec((1, OUT_PAD), resident),              # b4 (padded)
            ],
            out_specs=pl.BlockSpec((tb, OUT_PAD), lambda i: (i, 0)),
        ),
        compiler_params=pltpu.CompilerParams(
            dimension_semantics=("parallel",),
        ),
        cost_estimate=pl.CostEstimate(
            flops=flops, transcendentals=0, bytes_accessed=bytes_accessed),
    )(x, w1, b1, w2, b2, w3, b3, w4, b4)

    return out_padded[:B, :action_dim].astype(jnp.float32)


def dqn_reference(x, params):
    """Plain-JAX reference with matching bf16-operand / f32-accumulate math and
    the same final bf16 rounding as the kernel's output store."""
    h = x
    for i, (w, b) in enumerate(params):
        h = jnp.dot(h.astype(jnp.bfloat16), w.astype(jnp.bfloat16),
                    preferred_element_type=jnp.float32) + b
        if i < len(params) - 1:
            h = jnp.maximum(h, 0.0)
    return h.astype(jnp.bfloat16).astype(jnp.float32)


if __name__ == "__main__":
    key = jax.random.PRNGKey(0)
    key_params, key_x = jax.random.split(key)

    batch = 2
    state_dim = 16
    action_dim = 5

    params = make_dqn_params(key_params, state_dim, action_dim)
    prepared, action_dim = prepare_dqn_params(params)   # one-time weight prep
    x = jax.random.normal(key_x, (batch, state_dim), dtype=jnp.float32)

    out = dqn_forward(x, prepared, action_dim=action_dim)
    out = jax.block_until_ready(out)

    ref = dqn_reference(x, params)
    assert out.shape == (batch, action_dim)
    assert jnp.allclose(out, ref, atol=1e-2, rtol=1e-2), "mismatch vs reference"

    print("KERNEL_OK")
</pallas_src>

<mosaic_0001>
module attributes {stable_mosaic.version = 11 : i64} {
  func.func @dqn_kernel(%arg0: i32, %arg1: memref<16x16xf32, #tpu.memory_space<vmem>>, %arg2: memref<16x256xbf16, #tpu.memory_space<vmem>>, %arg3: memref<1x256xf32, #tpu.memory_space<vmem>>, %arg4: memref<256x256xbf16, #tpu.memory_space<vmem>>, %arg5: memref<1x256xf32, #tpu.memory_space<vmem>>, %arg6: memref<256x128xbf16, #tpu.memory_space<vmem>>, %arg7: memref<1x128xf32, #tpu.memory_space<vmem>>, %arg8: memref<128x128xbf16, #tpu.memory_space<vmem>>, %arg9: memref<1x128xf32, #tpu.memory_space<vmem>>, %arg10: memref<16x128xbf16, #tpu.memory_space<vmem>>) attributes {dimension_semantics = [#tpu.dimension_semantics<parallel>], iteration_bounds = array<i64: 1>, scalar_prefetch = 0 : i64, scratch_operands = 0 : i64, tpu.core_type = #tpu.core_type<tc>, window_params = [{transform_indices = @transform_0, window_bounds = array<i64: 16, 16>}, {pipeline_mode = #tpu.pipeline_mode<synchronous>, transform_indices = @transform_1, window_bounds = array<i64: 16, 256>}, {pipeline_mode = #tpu.pipeline_mode<synchronous>, transform_indices = @transform_2, window_bounds = array<i64: 1, 256>}, {pipeline_mode = #tpu.pipeline_mode<synchronous>, transform_indices = @transform_3, window_bounds = array<i64: 256, 256>}, {pipeline_mode = #tpu.pipeline_mode<synchronous>, transform_indices = @transform_4, window_bounds = array<i64: 1, 256>}, {pipeline_mode = #tpu.pipeline_mode<synchronous>, transform_indices = @transform_5, window_bounds = array<i64: 256, 128>}, {pipeline_mode = #tpu.pipeline_mode<synchronous>, transform_indices = @transform_6, window_bounds = array<i64: 1, 128>}, {pipeline_mode = #tpu.pipeline_mode<synchronous>, transform_indices = @transform_7, window_bounds = array<i64: 128, 128>}, {pipeline_mode = #tpu.pipeline_mode<synchronous>, transform_indices = @transform_8, window_bounds = array<i64: 1, 128>}, {transform_indices = @transform_9, window_bounds = array<i64: 16, 128>}]} {
    %c0 = arith.constant 0 : index
    %c0_0 = arith.constant 0 : index
    %0 = vector.load %arg1[%c0, %c0_0] : memref<16x16xf32, #tpu.memory_space<vmem>>, vector<16x16xf32>
    %1 = arith.truncf %0 : vector<16x16xf32> to vector<16x16xbf16>
    %c0_1 = arith.constant 0 : index
    %c0_2 = arith.constant 0 : index
    %2 = vector.load %arg2[%c0_1, %c0_2] : memref<16x256xbf16, #tpu.memory_space<vmem>>, vector<16x256xbf16>
    %cst = arith.constant dense<0.000000e+00> : vector<16x256xf32>
    %3 = tpu.matmul %1, %2, %cst {dimension_numbers = #tpu.dot_dimension_numbers<[1], [0], [0], [1], [0, 0, 1, 1], [], []>} : vector<16x16xbf16>, vector<16x256xbf16>, vector<16x256xf32> -> vector<16x256xf32>
    %c0_3 = arith.constant 0 : index
    %c0_4 = arith.constant 0 : index
    %4 = vector.load %arg3[%c0_3, %c0_4] : memref<1x256xf32, #tpu.memory_space<vmem>>, vector<1x256xf32>
    %5 = vector.broadcast %4 : vector<1x256xf32> to vector<16x256xf32>
    %6 = arith.addf %3, %5 : vector<16x256xf32>
    %cst_5 = arith.constant 0.000000e+00 : f32
    %7 = vector.broadcast %cst_5 : f32 to vector<16x256xf32>
    %8 = arith.maximumf %6, %7 : vector<16x256xf32>
    %9 = arith.truncf %8 : vector<16x256xf32> to vector<16x256xbf16>
    %c0_6 = arith.constant 0 : index
    %c0_7 = arith.constant 0 : index
    %10 = vector.load %arg4[%c0_6, %c0_7] : memref<256x256xbf16, #tpu.memory_space<vmem>>, vector<256x256xbf16>
    %cst_8 = arith.constant dense<0.000000e+00> : vector<16x256xf32>
    %11 = tpu.matmul %9, %10, %cst_8 {dimension_numbers = #tpu.dot_dimension_numbers<[1], [0], [0], [1], [0, 0, 1, 1], [], []>} : vector<16x256xbf16>, vector<256x256xbf16>, vector<16x256xf32> -> vector<16x256xf32>
    %c0_9 = arith.constant 0 : index
    %c0_10 = arith.constant 0 : index
    %12 = vector.load %arg5[%c0_9, %c0_10] : memref<1x256xf32, #tpu.memory_space<vmem>>, vector<1x256xf32>
    %13 = vector.broadcast %12 : vector<1x256xf32> to vector<16x256xf32>
    %14 = arith.addf %11, %13 : vector<16x256xf32>
    %cst_11 = arith.constant 0.000000e+00 : f32
    %15 = vector.broadcast %cst_11 : f32 to vector<16x256xf32>
    %16 = arith.maximumf %14, %15 : vector<16x256xf32>
    %17 = arith.truncf %16 : vector<16x256xf32> to vector<16x256xbf16>
    %c0_12 = arith.constant 0 : index
    %c0_13 = arith.constant 0 : index
    %18 = vector.load %arg6[%c0_12, %c0_13] : memref<256x128xbf16, #tpu.memory_space<vmem>>, vector<256x128xbf16>
    %cst_14 = arith.constant dense<0.000000e+00> : vector<16x128xf32>
    %19 = tpu.matmul %17, %18, %cst_14 {dimension_numbers = #tpu.dot_dimension_numbers<[1], [0], [0], [1], [0, 0, 1, 1], [], []>} : vector<16x256xbf16>, vector<256x128xbf16>, vector<16x128xf32> -> vector<16x128xf32>
    %c0_15 = arith.constant 0 : index
    %c0_16 = arith.constant 0 : index
    %20 = vector.load %arg7[%c0_15, %c0_16] : memref<1x128xf32, #tpu.memory_space<vmem>>, vector<1x128xf32>
    %21 = vector.broadcast %20 : vector<1x128xf32> to vector<16x128xf32>
    %22 = arith.addf %19, %21 : vector<16x128xf32>
    %cst_17 = arith.constant 0.000000e+00 : f32
    %23 = vector.broadcast %cst_17 : f32 to vector<16x128xf32>
    %24 = arith.maximumf %22, %23 : vector<16x128xf32>
    %25 = arith.truncf %24 : vector<16x128xf32> to vector<16x128xbf16>
    %c0_18 = arith.constant 0 : index
    %c0_19 = arith.constant 0 : index
    %26 = vector.load %arg8[%c0_18, %c0_19] : memref<128x128xbf16, #tpu.memory_space<vmem>>, vector<128x128xbf16>
    %cst_20 = arith.constant dense<0.000000e+00> : vector<16x128xf32>
    %27 = tpu.matmul %25, %26, %cst_20 {dimension_numbers = #tpu.dot_dimension_numbers<[1], [0], [0], [1], [0, 0, 1, 1], [], []>} : vector<16x128xbf16>, vector<128x128xbf16>, vector<16x128xf32> -> vector<16x128xf32>
    %c0_21 = arith.constant 0 : index
    %c0_22 = arith.constant 0 : index
    %28 = vector.load %arg9[%c0_21, %c0_22] : memref<1x128xf32, #tpu.memory_space<vmem>>, vector<1x128xf32>
    %29 = vector.broadcast %28 : vector<1x128xf32> to vector<16x128xf32>
    %30 = arith.addf %27, %29 : vector<16x128xf32>
    %31 = arith.truncf %30 : vector<16x128xf32> to vector<16x128xbf16>
    %c0_23 = arith.constant 0 : index
    %c0_24 = arith.constant 0 : index
    %32 = vector.load %arg10[%c0_23, %c0_24] : memref<16x128xbf16, #tpu.memory_space<vmem>>, vector<16x128xbf16>
    tpu.vector_store %arg10[%c0_23, %c0_24], %31 {strides = array<i32>} : memref<16x128xbf16, #tpu.memory_space<vmem>>, vector<16x128xbf16>,
    return
  }
  func.func @transform_0(%arg0: i32) -> (i32, i32) {
    %c0_i32 = arith.constant 0 : i32
    %c0_i32_0 = arith.constant 0 : i32
    return %arg0, %c0_i32 : i32, i32
  }
  func.func @transform_1(%arg0: i32) -> (i32, i32) {
    %c0_i32 = arith.constant 0 : i32
    %c0_i32_0 = arith.constant 0 : i32
    %c0_i32_1 = arith.constant 0 : i32
    return %c0_i32, %c0_i32_0 : i32, i32
  }
  func.func @transform_2(%arg0: i32) -> (i32, i32) {
    %c0_i32 = arith.constant 0 : i32
    %c0_i32_0 = arith.constant 0 : i32
    %c0_i32_1 = arith.constant 0 : i32
    return %c0_i32, %c0_i32_0 : i32, i32
  }
  func.func @transform_3(%arg0: i32) -> (i32, i32) {
    %c0_i32 = arith.constant 0 : i32
    %c0_i32_0 = arith.constant 0 : i32
    %c0_i32_1 = arith.constant 0 : i32
    return %c0_i32, %c0_i32_0 : i32, i32
  }
  func.func @transform_4(%arg0: i32) -> (i32, i32) {
    %c0_i32 = arith.constant 0 : i32
    %c0_i32_0 = arith.constant 0 : i32
    %c0_i32_1 = arith.constant 0 : i32
    return %c0_i32, %c0_i32_0 : i32, i32
  }
  func.func @transform_5(%arg0: i32) -> (i32, i32) {
    %c0_i32 = arith.constant 0 : i32
    %c0_i32_0 = arith.constant 0 : i32
    %c0_i32_1 = arith.constant 0 : i32
    return %c0_i32, %c0_i32_0 : i32, i32
  }
  func.func @transform_6(%arg0: i32) -> (i32, i32) {
    %c0_i32 = arith.constant 0 : i32
    %c0_i32_0 = arith.constant 0 : i32
    %c0_i32_1 = arith.constant 0 : i32
    return %c0_i32, %c0_i32_0 : i32, i32
  }
  func.func @transform_7(%arg0: i32) -> (i32, i32) {
    %c0_i32 = arith.constant 0 : i32
    %c0_i32_0 = arith.constant 0 : i32
    %c0_i32_1 = arith.constant 0 : i32
    return %c0_i32, %c0_i32_0 : i32, i32
  }
  func.func @transform_8(%arg0: i32) -> (i32, i32) {
    %c0_i32 = arith.constant 0 : i32
    %c0_i32_0 = arith.constant 0 : i32
    %c0_i32_1 = arith.constant 0 : i32
    return %c0_i32, %c0_i32_0 : i32, i32
  }
  func.func @transform_9(%arg0: i32) -> (i32, i32) {
    %c0_i32 = arith.constant 0 : i32
    %c0_i32_0 = arith.constant 0 : i32
    return %arg0, %c0_i32 : i32, i32
  }
}

</mosaic_0001>

<bundles_post_ra>
// kernel: dqn_forward.1
= control target key start
LH: loop header
LB: loop body
LE: loop exit
PB: predicated region body
PF: predicated region fallthrough
CT: control target
= control target key end

     0   :  { %14 = vsyncpa [#allocation3], 0  ;;  %s1119_s0 = inlined_call_operand.vmem [shape: f32[16,16], index: 0, kind: input, shape index: {}]   ;;  %s1120_s1 = inlined_call_operand.vmem [shape: bf16[16,256], index: 1, kind: input, shape index: {}]   ;;  %s1121_s2 = inlined_call_operand.vmem [shape: f32[1,256], index: 2, kind: input, shape index: {}]   ;;  %s1122_s3 = inlined_call_operand.hbm [shape: bf16[256,256], index: 3, kind: input, shape index: {}]   ;;  %s1123_s4 = inlined_call_operand.vmem [shape: f32[1,256], index: 4, kind: input, shape index: {}]   ;;  %s1124_s5 = inlined_call_operand.hbm [shape: bf16[256,128], index: 5, kind: input, shape index: {}]   ;;  %s1125_s6 = inlined_call_operand.vmem [shape: f32[1,128], index: 6, kind: input, shape index: {}]   ;;  %s1126_s7 = inlined_call_operand.hbm [shape: bf16[128,128], index: 7, kind: input, shape index: {}]   ;;  %s1127_s8 = inlined_call_operand.vmem [shape: f32[1,128], index: 8, kind: input, shape index: {}]   ;;  %s1128_s9 = inlined_call_operand.vmem [shape: bf16[16,128], index: 9, kind: output, shape index: {}]  }
   0x1   :  { %15 = vsyncpa [#allocation5], 0  ;;  %s990_s30 = smov [#allocation4]   ;;  %s920_s13 = scalar_lea.hbm %s1124_s5, 2048 }
   0x2   :  { %s41_s10 = sshll.u32 %s990_s30, 4  ;;  %p921_p0 = scmp.ne.s32.totalorder %s1124_s5, %s920_s13  ;;  %s42_s10 = int_to_ptr.vmem [resolvable:$true] %s41_s10 }
   0x3   :  { %p924_p1 = scmp.lt.u32.totalorder %s920_s13, %s1124_s5 }
   0x5   :  { %p926_p2 = pnand %p924_p1, %p921_p0 }
   0x7   :  { %929 = shalt.err (!%p926_p2)
}
   0x8   :  { %s930_s18 = scalar_lea.vmem %s42_s10, 2048  ;;  %p935_p4 = scmp.lt.s32.totalorder %s42_s10, %s42_s10 }
   0x9   :  { %p931_p3 = scmp.ne.s32.totalorder %s42_s10, %s930_s18  ;;  %p936_p5 = scmp.lt.s32.totalorder %s930_s18, %s930_s18 }
   0xb   :  { %p937_p6 = por %p936_p5, %p935_p4 }
   0xd   :  { %p938_p7 = pnand %p937_p6, %p931_p3 }
   0xf   :  { %941 = shalt.err (!%p938_p7)
}
  0x10   :  { %s991_s19 = smov 64   ;;  %s992_s20 = smov 4  }
  0x11   :  { %47 = dma.hbm_to_vmem [thread:$0]  %s1124_s5, 2048, %s42_s10, [#allocation5], %s991_s19, %s991_s19, %s992_s20  }
  0x12   :  { %s993_s23 = smov [#allocation2]   ;;  %s942_s27 = scalar_lea.hbm %s1122_s3, 4096 }
  0x13   :  { %s27_s24 = sshll.u32 %s993_s23, 4  ;;  %p943_p8 = scmp.ne.s32.totalorder %s1122_s3, %s942_s27  ;;  %s28_s24 = int_to_ptr.vmem [resolvable:$true] %s27_s24 }
  0x14   :  { %p946_p9 = scmp.lt.u32.totalorder %s942_s27, %s1122_s3 }
  0x16   :  { %p948_p10 = pnand %p946_p9, %p943_p8 }
  0x18   :  { %951 = shalt.err (!%p948_p10)
}
  0x19   :  { %s952_s12 = scalar_lea.vmem %s28_s24, 4096  ;;  %p957_p12 = scmp.lt.s32.totalorder %s28_s24, %s28_s24 }
  0x1a   :  { %p953_p11 = scmp.ne.s32.totalorder %s28_s24, %s952_s12  ;;  %p958_p13 = scmp.lt.s32.totalorder %s952_s12, %s952_s12 }
  0x1c   :  { %p959_p0 = por %p958_p13, %p957_p12 }
  0x1e   :  { %p960_p1 = pnand %p959_p0, %p953_p11 }
  0x20   :  { %963 = shalt.err (!%p960_p1)
}
  0x21   :  { %s994_s5 = smov 128   ;;  %s995_s10 = smov 8  }
  0x22   :  { %33 = dma.hbm_to_vmem [thread:$0]  %s1122_s3, 4096, %s28_s24, [#allocation3], %s994_s5, %s994_s5, %s995_s10  }
  0x23   :  { %s996_s15 = smov [#allocation6]   ;;  %s964_s21 = scalar_lea.hbm %s1126_s7, 1024 }
  0x24   :  { %s55_s16 = sshll.u32 %s996_s15, 4  ;;  %p965_p2 = scmp.ne.s32.totalorder %s1126_s7, %s964_s21  ;;  %s56_s16 = int_to_ptr.vmem [resolvable:$true] %s55_s16 }
  0x25   :  { %p968_p3 = scmp.lt.u32.totalorder %s964_s21, %s1126_s7 }
  0x27   :  { %p970_p4 = pnand %p968_p3, %p965_p2 }
  0x29   :  { %973 = shalt.err (!%p970_p4)
}
  0x2a   :  { %s974_s27 = scalar_lea.vmem %s56_s16, 1024  ;;  %p979_p6 = scmp.lt.s32.totalorder %s56_s16, %s56_s16 }
  0x2b   :  { %p975_p5 = scmp.ne.s32.totalorder %s56_s16, %s974_s27  ;;  %p980_p7 = scmp.lt.s32.totalorder %s974_s27, %s974_s27 }
  0x2d   :  { %p981_p8 = por %p980_p7, %p979_p6 }
  0x2f   :  { %p982_p9 = pnand %p981_p8, %p975_p5 }
  0x31   :  { %985 = shalt.err (!%p982_p9)
}
  0x32   :  { %61 = dma.hbm_to_vmem [thread:$0]  %s1126_s7, 1024, %s56_s16, [#allocation5], %s991_s19, %s991_s19, %s992_s20  }
  0x33   :  { %986 = dma.done.wait [#allocation3], 4096  }
  0x34   :  { %987 = vsyncadd [#allocation3], 4294963200 }
  0x35   :  { %988 = dma.done.wait [#allocation5], 3072  }
  0x36   :  { %989 = vsyncadd [#allocation5], 4294964224  ;;  %v997_v0 = vmov 0   ;;  %v845_v1 = vld [vmem:[%s1120_s1 + $0x4] ss:$8 sps:$4 sm:$0xff]   ;;  %vm101_vm0 = vcmask 130048   ;;  %v81_v49 = vlaneseq }
  0x37   :  { %137 = vmatprep.mubr.bf16.mxu0 %v997_v0  ;;  %v847_v2 = vld [vmem:[%s1120_s1] ss:$8 sps:$4 sm:$0xff]   ;;  %105 = vmatprep.subr.bf16.mxu0 %v845_v1  ;;  %v848_v6 = vld [vmem:[#allocation2 + $0x4] ss:$8 sps:$4 sm:$0xff]   ;;  %v851_v8 = vld [vmem:[#allocation2 + $0x14] ss:$8 sps:$4 sm:$0xff]  }
  0x38   :  { %v74_v3 = vld [vmem:[%s1119_s0] sm:$0xff]  ;;  %v75_v4 = vld [vmem:[%s1119_s0 + $0x8] sm:$0xff]  ;;  %106 = vmatpush1.bf16.msra.mxu0 %v847_v2  ;;  %358 = vmatprep.subr.bf16.mxu1 %v848_v6  ;;  %v853_v9 = vld [vmem:[#allocation2 + $0x10] ss:$8 sps:$4 sm:$0xff]   ;;  %v82_v50 = vshrl.u32 %v81_v49, 7  ;;  %vm999_vm1 = vmmov 0  }
  0x39   :  { %v76_v5 = vpack.c.bf16 %v75_v4, %v74_v3  ;;  %v850_v7 = vld [vmem:[#allocation2] ss:$8 sps:$4 sm:$0xff]   ;;  %v854_v10 = vld [vmem:[#allocation2 + $0x24] ss:$8 sps:$4 sm:$0xff]   ;;  %v857_v12 = vld [vmem:[#allocation2 + $0x34] ss:$8 sps:$4 sm:$0xff]  }
  0x3a   :  { %359 = vmatpush1.bf16.msra.mxu1 %v850_v7  ;;  %v856_v11 = vld [vmem:[#allocation2 + $0x20] ss:$8 sps:$4 sm:$0xff]   ;;  %v859_v13 = vld [vmem:[#allocation2 + $0x30] ss:$8 sps:$4 sm:$0xff]   ;;  %v860_v14 = vld [vmem:[#allocation2 + $0x44] ss:$8 sps:$4 sm:$0xff]  }
  0x3b   :  { %716 = vmatmul.mubr.msk.bf16.vlgmr.msra.gmra.mrb[0].mxu0 %vm101_vm0, %v76_v5  ;;  %360 = vmatprep.subr.bf16.mxu1 %v851_v8  ;;  %v862_v15 = vld [vmem:[#allocation2 + $0x40] ss:$8 sps:$4 sm:$0xff]   ;;  %v863_v16 = vld [vmem:[#allocation2 + $0x54] ss:$8 sps:$4 sm:$0xff]   ;;  %v865_v17 = vld [vmem:[#allocation2 + $0x50] ss:$8 sps:$4 sm:$0xff]  }
  0x3c   :  { %v866_v18 = vld [vmem:[#allocation2 + $0x64] ss:$8 sps:$4 sm:$0xff]   ;;  %v868_v19 = vld [vmem:[#allocation2 + $0x60] ss:$8 sps:$4 sm:$0xff]   ;;  %v869_v20 = vld [vmem:[#allocation2 + $0x74] ss:$8 sps:$4 sm:$0xff]  }
  0x3d   :  { %v871_v21 = vld [vmem:[#allocation2 + $0x70] ss:$8 sps:$4 sm:$0xff]   ;;  %v872_v22 = vld [vmem:[#allocation2 + $0x84] ss:$8 sps:$4 sm:$0xff]   ;;  %v874_v23 = vld [vmem:[#allocation2 + $0x80] ss:$8 sps:$4 sm:$0xff]  }
  0x3e   :  { %361 = vmatpush1.bf16.msra.mxu1 %v853_v9  ;;  %v875_v24 = vld [vmem:[#allocation2 + $0x94] ss:$8 sps:$4 sm:$0xff]   ;;  %v877_v25 = vld [vmem:[#allocation2 + $0x90] ss:$8 sps:$4 sm:$0xff]   ;;  %v878_v26 = vld [vmem:[#allocation2 + $0xa4] ss:$8 sps:$4 sm:$0xff]  }
  0x3f   :  { %362 = vmatprep.subr.bf16.mxu1 %v854_v10  ;;  %v880_v27 = vld [vmem:[#allocation2 + $0xa0] ss:$8 sps:$4 sm:$0xff]   ;;  %v881_v28 = vld [vmem:[#allocation2 + $0xb4] ss:$8 sps:$4 sm:$0xff]   ;;  %v883_v29 = vld [vmem:[#allocation2 + $0xb0] ss:$8 sps:$4 sm:$0xff]  }
  0x40   :  { %v884_v30 = vld [vmem:[#allocation2 + $0xc4] ss:$8 sps:$4 sm:$0xff]   ;;  %v886_v31 = vld [vmem:[#allocation2 + $0xc0] ss:$8 sps:$4 sm:$0xff]   ;;  %v887_v32 = vld [vmem:[#allocation2 + $0xd4] ss:$8 sps:$4 sm:$0xff]  }
  0x41   :  { %v889_v33 = vld [vmem:[#allocation2 + $0xd0] ss:$8 sps:$4 sm:$0xff]   ;;  %v890_v34 = vld [vmem:[#allocation2 + $0xe4] ss:$8 sps:$4 sm:$0xff]   ;;  %v892_v35 = vld [vmem:[#allocation2 + $0xe0] ss:$8 sps:$4 sm:$0xff]  }
  0x42   :  { %363 = vmatpush1.bf16.msra.mxu1 %v856_v11  ;;  %v893_v36 = vld [vmem:[#allocation2 + $0xf4] ss:$8 sps:$4 sm:$0xff]   ;;  %v895_v37 = vld [vmem:[#allocation2 + $0xf0] ss:$8 sps:$4 sm:$0xff]   ;;  %v896_v38 = vld [vmem:[#allocation4 + $0x40] sm:$0xff]   ;;  %v83_v51 = vsub.s32 0, %v82_v50 }
  0x43   :  { %364 = vmatprep.subr.bf16.mxu1 %v857_v12  ;;  %v897_v39 = vld [vmem:[#allocation4] sm:$0xff]   ;;  %v898_v40 = vld [vmem:[#allocation4 + $0x48] sm:$0xff]   ;;  %784 = vmatprep.subr.bf16.mxu0 %v896_v38  ;;  %v900_v42 = vld [vmem:[#allocation4 + $0x50] sm:$0xff]   ;;  %v87_v53 = vsub.s32 1, %v82_v50  ;;  %v998_v11 = vmov 0.0  }
  0x44   :  { %785 = vmatpush3.bf16.msra.mxu0 %v897_v39  ;;  %v899_v41 = vld [vmem:[#allocation4 + $0x8] sm:$0xff]   ;;  %v901_v43 = vld [vmem:[#allocation4 + $0x10] sm:$0xff]   ;;  %v902_v44 = vld [vmem:[#allocation4 + $0x58] sm:$0xff]  }
  0x45   :  { %786 = vmatprep.subr.bf16.mxu0 %v898_v40  ;;  %v903_v45 = vld [vmem:[#allocation4 + $0x18] sm:$0xff]   ;;  %v904_v46 = vld [vmem:[#allocation4 + $0x60] sm:$0xff]   ;;  %v906_v48 = vld [vmem:[#allocation4 + $0x68] sm:$0xff]  }
  0x46   :  { %365 = vmatpush1.bf16.msra.mxu1 %v859_v13  ;;  %v905_v47 = vld [vmem:[#allocation4 + $0x20] sm:$0xff]   ;;  %v907_v6 = vld [vmem:[#allocation4 + $0x28] sm:$0xff]   ;;  %v908_v7 = vld [vmem:[#allocation4 + $0x70] sm:$0xff]  }
  0x47   :  { %366 = vmatprep.subr.bf16.mxu1 %v860_v14  ;;  %v79_v52 = vld [vmem:[%s1121_s2] sm:$0x3]  ;;  %v909_v8 = vld [vmem:[#allocation4 + $0x30] sm:$0xff]   ;;  %v910_v9 = vld [vmem:[#allocation4 + $0x78] sm:$0xff]  }
  0x48   :  { %787 = vmatpush3.bf16.msra.mxu0 %v899_v41  ;;  %v84_v54 = vrot.slane %v79_v52, %v83_v51  ;;  %v88_v55 = vrot.slane %v79_v52, %v87_v53  ;;  %v911_v10 = vld [vmem:[#allocation4 + $0x38] sm:$0xff]   ;;  %v186_v12 = vld [vmem:[%s1123_s4] sm:$0x3] }
  0x49   :  { %788 = vmatprep.subr.bf16.mxu0 %v900_v42  ;;  %v191_v13 = vrot.slane %v186_v12, %v83_v51  ;;  %v195_v14 = vrot.slane %v186_v12, %v87_v53  ;;  %v749_v38 = vld [vmem:[%s1125_s6] ss:$0 sm:$0xff] }
  0x4a   :  { %367 = vmatpush1.bf16.msra.mxu1 %v862_v15  ;;  %v766_v49 = vld [vmem:[%s1127_s8] ss:$0 sm:$0xff] }
  0x4b   :  { %368 = vmatprep.subr.bf16.mxu1 %v863_v16 }
  0x4c   :  { %789 = vmatpush3.bf16.msra.mxu0 %v901_v43 }
  0x4d   :  { %790 = vmatprep.subr.bf16.mxu0 %v902_v44 }
  0x4e   :  { %369 = vmatpush1.bf16.msra.mxu1 %v865_v17 }
  0x4f   :  { %370 = vmatprep.subr.bf16.mxu1 %v866_v18 }
  0x50   :  { %791 = vmatpush3.bf16.msra.mxu0 %v903_v45 }
  0x51   :  { %792 = vmatprep.subr.bf16.mxu0 %v904_v46 }
  0x52   :  { %371 = vmatpush1.bf16.msra.mxu1 %v868_v19 }
  0x53   :  { %372 = vmatprep.subr.bf16.mxu1 %v869_v20 }
  0x54   :  { %793 = vmatpush3.bf16.msra.mxu0 %v905_v47 }
  0x55   :  { %794 = vmatprep.subr.bf16.mxu0 %v906_v48 }
  0x56   :  { %373 = vmatpush1.bf16.msra.mxu1 %v871_v21 }
  0x57   :  { %374 = vmatprep.subr.bf16.mxu1 %v872_v22 }
  0x58   :  { %795 = vmatpush3.bf16.msra.mxu0 %v907_v6 }
  0x59   :  { %796 = vmatprep.subr.bf16.mxu0 %v908_v7 }
  0x5a   :  { %375 = vmatpush1.bf16.msra.mxu1 %v874_v23 }
  0x5b   :  { %376 = vmatprep.subr.bf16.mxu1 %v875_v24 }
  0x5c   :  { %797 = vmatpush3.bf16.msra.mxu0 %v909_v8 }
  0x5d   :  { %798 = vmatprep.subr.bf16.mxu0 %v910_v9 }
  0x5e   :  { %377 = vmatpush1.bf16.msra.mxu1 %v877_v25 }
  0x5f   :  { %378 = vmatprep.subr.bf16.mxu1 %v878_v26 }
  0x60   :  { %799 = vmatpush3.bf16.msra.mxu0 %v911_v10 }
  0x61   :  { %815 = vmatprep.subr.bf16.mxu0 %v998_v11 }
  0x62   :  { %379 = vmatpush1.bf16.msra.mxu1 %v880_v27 }
  0x63   :  { %380 = vmatprep.subr.bf16.mxu1 %v881_v28 }
  0x66   :  { %381 = vmatpush1.bf16.msra.mxu1 %v883_v29  ;;  %v912_v29 = vld [vmem:[#allocation6] sm:$0xff]  }
  0x67   :  { %382 = vmatprep.subr.bf16.mxu1 %v884_v30  ;;  %v913_v30 = vld [vmem:[#allocation6 + $0x8] sm:$0xff]  }
  0x6a   :  { %383 = vmatpush1.bf16.msra.mxu1 %v886_v31  ;;  %v914_v31 = vld [vmem:[#allocation6 + $0x10] sm:$0xff]  }
  0x6b   :  { %384 = vmatprep.subr.bf16.mxu1 %v887_v32  ;;  %v915_v32 = vld [vmem:[#allocation6 + $0x18] sm:$0xff]  }
  0x6e   :  { %385 = vmatpush1.bf16.msra.mxu1 %v889_v33  ;;  %v916_v33 = vld [vmem:[#allocation6 + $0x20] sm:$0xff]  }
  0x6f   :  { %386 = vmatprep.subr.bf16.mxu1 %v890_v34  ;;  %v917_v34 = vld [vmem:[#allocation6 + $0x28] sm:$0xff]  }
  0x72   :  { %387 = vmatpush1.bf16.msra.mxu1 %v892_v35  ;;  %v918_v35 = vld [vmem:[#allocation6 + $0x30] sm:$0xff]  }
  0x73   :  { %388 = vmatprep.subr.bf16.mxu1 %v893_v36  ;;  %v919_v36 = vld [vmem:[#allocation6 + $0x38] sm:$0xff]  }
  0x76   :  { %389 = vmatpush1.bf16.msra.mxu1 %v895_v37 }
 0x10e   :  { %v139_v56 = vpop.f32.mrb[0].mxu0 }
 0x10f   :  { %v140_v57 = vadd.f32 %v139_v56, %v84_v54  ;;  %v141_v58 = vpop.f32.mrb[1].mxu0 }
 0x110   :  { %v142_v59 = vadd.f32 %v141_v58, %v88_v55  ;;  %v143_v60 = vpop.f32.mrb[2].mxu0 }
 0x111   :  { %v144_v61 = vadd.f32 %v143_v60, %v84_v54  ;;  %v145_v62 = vpop.f32.mrb[3].mxu0  ;;  %v148_v0 = vmax.f32 %v140_v57, 0.0 }
 0x112   :  { %v146_v63 = vadd.f32 %v145_v62, %v88_v55  ;;  %v149_v2 = vmax.f32 %v142_v59, 0.0 }
 0x113   :  { %v150_v1 = vmax.f32 %v144_v61, 0.0 }
 0x114   :  { %v151_v3 = vmax.f32 %v146_v63, 0.0 }
 0x115   :  { %v152_v4 = vpack.c.bf16 %v150_v1, %v148_v0 }
 0x116   :  { %v153_v5 = vpack.c.bf16 %v151_v3, %v149_v2 }
 0x118   :  { %390 = vmatprep.mubr.bf16.mxu1 %v153_v5 }
 0x119   :  { %391 = vmatmul.mubr.bf16.vlgmr.msra.gmra.mrb[0].mxu1 %v152_v4 }
 0x1ec   :  { %v392_v15 = vpop.f32.mrb[0].mxu1 }
 0x1ed   :  { %v393_v16 = vadd.f32 %v392_v15, %v191_v13  ;;  %v394_v17 = vpop.f32.mrb[1].mxu1 }
 0x1ee   :  { %v395_v18 = vadd.f32 %v394_v17, %v195_v14  ;;  %v396_v19 = vpop.f32.mrb[2].mxu1 }
 0x1ef   :  { %v397_v20 = vadd.f32 %v396_v19, %v191_v13  ;;  %v398_v21 = vpop.f32.mrb[3].mxu1  ;;  %v401_v23 = vmax.f32 %v393_v16, 0.0 }
 0x1f0   :  { %v399_v22 = vadd.f32 %v398_v21, %v195_v14  ;;  %v402_v25 = vmax.f32 %v395_v18, 0.0 }
 0x1f1   :  { %v403_v24 = vmax.f32 %v397_v20, 0.0 }
 0x1f2   :  { %v404_v26 = vmax.f32 %v399_v22, 0.0 }
 0x1f3   :  { %v405_v27 = vpack.c.bf16 %v403_v24, %v401_v23 }
 0x1f4   :  { %v406_v28 = vpack.c.bf16 %v404_v26, %v402_v25 }
 0x1f6   :  { %574 = vmatprep.mubr.bf16.mxu0 %v406_v28 }
 0x1f7   :  { %575 = vmatmul.mubr.bf16.vlgmr.msra.gmra.mrb[4].mxu0 %v405_v27 }
 0x1f8   :  { %816 = vmatpush3.bf16.msra.mxu0 %v912_v29  ;;  %831 = vmatprep.mubr.msk.bf16.mxu0 %vm999_vm1, %v998_v11 }
 0x1f9   :  { %817 = vmatprep.subr.bf16.mxu0 %v998_v11 }
 0x1fc   :  { %818 = vmatpush3.bf16.msra.mxu0 %v913_v30 }
 0x1fd   :  { %819 = vmatprep.subr.bf16.mxu0 %v998_v11 }
 0x200   :  { %820 = vmatpush3.bf16.msra.mxu0 %v914_v31 }
 0x201   :  { %821 = vmatprep.subr.bf16.mxu0 %v998_v11 }
 0x204   :  { %822 = vmatpush3.bf16.msra.mxu0 %v915_v32 }
 0x205   :  { %823 = vmatprep.subr.bf16.mxu0 %v998_v11 }
 0x208   :  { %824 = vmatpush3.bf16.msra.mxu0 %v916_v33 }
 0x209   :  { %825 = vmatprep.subr.bf16.mxu0 %v998_v11 }
 0x20c   :  { %826 = vmatpush3.bf16.msra.mxu0 %v917_v34 }
 0x20d   :  { %827 = vmatprep.subr.bf16.mxu0 %v998_v11 }
 0x210   :  { %828 = vmatpush3.bf16.msra.mxu0 %v918_v35 }
 0x211   :  { %829 = vmatprep.subr.bf16.mxu0 %v998_v11 }
 0x214   :  { %830 = vmatpush3.bf16.msra.mxu0 %v919_v36 }
 0x2ca   :  { %v800_v37 = vpop.f32.mrb[4].mxu0 }
 0x2cb   :  { %v801_v39 = vpop.f32.mrb[5].mxu0 }
 0x2cc   :  { %v802_v40 = vadd.f32 %v801_v39, %v800_v37  ;;  %v803_v41 = vpop.f32.mrb[6].mxu0 }
 0x2cd   :  { %v804_v42 = vpop.f32.mrb[7].mxu0 }
 0x2ce   :  { %v577_v43 = vadd.f32 %v802_v40, %v749_v38  ;;  %v805_v44 = vadd.f32 %v804_v42, %v803_v41 }
 0x2d0   :  { %v580_v45 = vadd.f32 %v805_v44, %v749_v38  ;;  %v583_v46 = vmax.f32 %v577_v43, 0.0 }
 0x2d2   :  { %v584_v47 = vmax.f32 %v580_v45, 0.0 }
 0x2d4   :  { %v585_v48 = vpack.c.bf16 %v584_v47, %v583_v46 }
 0x2d6   :  { %832 = vmatmul.mubr.bf16.vlgmr.msra.gmra.mrb[8].mxu0 %v585_v48 }
 0x3a9   :  { %v691_v50 = vpop.f32.mrb[8].mxu0 }
 0x3aa   :  { %v833_v51 = vpop.f32.mrb[9].mxu0  ;;  %v692_v53 = vadd.f32 %v766_v49, %v691_v50 }
 0x3ab   :  { %v694_v52 = vpop.f32.mrb[10].mxu0 }
 0x3ac   :  { %v695_v54 = vadd.f32 %v766_v49, %v694_v52  ;;  %v834_v55 = vpop.f32.mrb[11].mxu0 }
 0x3ae   :  { %v782_v56 = vpack.c.bf16 %v695_v54, %v692_v53 }
 0x3b0   :  { %783 = vst [vmem:[%s1128_s9] sm:$0xff] %v782_v56  }
 0x3b1   :  { %712 = vsyncpa [#allocation3], 1 }
 0x3b2   :  { %713 = vsyncpa [#allocation5], 1 }

</bundles_post_ra>
